<compile_context>
chip_gen: v6e
topology: v6e:2x2x1
jax: 0.10.0
libtpu: 0.0.40
codegen_flags: <defaults>
</compile_context>

<pallas_src>
import jax
import jax.numpy as jnp
from jax.experimental import pallas as pl
from jax.experimental.pallas import tpu as pltpu


def _fusion_conv_kernel(xp_ref, xi_ref, wp_ref, wi_ref, b_ref, o_ref):
    # xp_ref: (Cp, TN)  point-feature tile            (compute dtype, e.g. bf16)
    # xi_ref: (Ci, TN)  image-feature tile            (compute dtype)
    # wp_ref: (O, Cp)   BN-folded weight, point half  (compute dtype, resident)
    # wi_ref: (O, Ci)   BN-folded weight, image half  (compute dtype, resident)
    # b_ref:  (O, 1)    BN-folded bias (float32, resident)
    # o_ref:  (O, TN)   output tile
    y = jnp.dot(wp_ref[...], xp_ref[...], preferred_element_type=jnp.float32)
    y = y + jnp.dot(wi_ref[...], xi_ref[...], preferred_element_type=jnp.float32)
    y = y + b_ref[...]                         # f32 epilogue; (O,1) broadcasts over TN
    o_ref[...] = jnp.maximum(y, 0.0).astype(o_ref.dtype)


def _choose_tile_n(N):
    """Lane-aligned tile of the point axis, sized to stay well inside scoped VMEM
    (<= ~a few MiB per double-buffered tile even at C=O=512, safe on v7x's 32 MiB)."""
    if N <= 1024:
        return N       # block == full dim is always legal (even if not /128)
    return 1024        # multiple of 128; a partial last tile is handled by masking


def fusion_conv_forward(point_features, img_features, params, *,
                        eps=1e-5, compute_dtype=jnp.bfloat16,
                        out_dtype=jnp.float32):
    """point_features: (B, Cp, N), img_features: (B, Ci, N) -> (B, O, N)."""
    B, Cp, N = point_features.shape
    Bi, Ci, Ni = img_features.shape
    assert B == Bi and N == Ni

    w, conv_bias = params["conv_w"], params["conv_b"]            # (O, Cp+Ci), (O,)
    gamma, beta = params["bn_gamma"], params["bn_beta"]          # (O,)
    mean, var = params["bn_mean"], params["bn_var"]              # (O,)
    O = w.shape[0]

    # --- fold BN (inference, running stats) into the 1x1 conv, then split the
    #     weight along the concat axis so the concatenated activation tensor is
    #     never materialized in HBM ---
    scale = gamma / jnp.sqrt(var + eps)                          # (O,)
    w_eff = w.astype(jnp.float32) * scale[:, None]               # (O, Cp+Ci)
    wp = w_eff[:, :Cp].astype(compute_dtype)                     # (O, Cp)
    wi = w_eff[:, Cp:].astype(compute_dtype)                     # (O, Ci)
    b_eff = (scale * conv_bias + beta - scale * mean)            # (O,)
    b_eff = b_eff.astype(jnp.float32).reshape(O, 1)              # (O, 1) f32 epilogue

    # In a real pipeline the activations already live in compute_dtype (bf16);
    # this cast is then a no-op.
    xp = point_features.astype(compute_dtype)
    xi = img_features.astype(compute_dtype)

    TN = _choose_tile_n(N)
    n_tiles = pl.cdiv(N, TN)

    out = pl.pallas_call(
        _fusion_conv_kernel,
        out_shape=jax.ShapeDtypeStruct((B, O, N), out_dtype),
        grid_spec=pltpu.PrefetchScalarGridSpec(
            num_scalar_prefetch=0,
            grid=(B, n_tiles),
            in_specs=[
                pl.BlockSpec((None, Cp, TN), lambda b, n: (b, 0, n)),  # xp tile
                pl.BlockSpec((None, Ci, TN), lambda b, n: (b, 0, n)),  # xi tile
                pl.BlockSpec((O, Cp), lambda b, n: (0, 0)),            # W_p (VMEM-resident)
                pl.BlockSpec((O, Ci), lambda b, n: (0, 0)),            # W_i (VMEM-resident)
                pl.BlockSpec((O, 1), lambda b, n: (0, 0)),             # bias (VMEM-resident)
            ],
            out_specs=pl.BlockSpec((None, O, TN), lambda b, n: (b, 0, n)),
        ),
        compiler_params=pltpu.CompilerParams(
            dimension_semantics=("parallel", "parallel"),
        ),
    )(xp, xi, wp, wi, b_eff)
    return out


def init_params(key, inplanes, outplanes):
    k_w, k_b, k_g, k_be, k_m, k_v = jax.random.split(key, 6)
    return {
        # Conv1d(inplanes, outplanes, 1): weight (O, C, 1) -> stored as (O, C)
        "conv_w": jax.random.normal(k_w, (outplanes, inplanes), jnp.float32) * 0.1,
        "conv_b": jax.random.normal(k_b, (outplanes,), jnp.float32) * 0.1,
        # BatchNorm1d(outplanes)
        "bn_gamma": 1.0 + 0.1 * jax.random.normal(k_g, (outplanes,), jnp.float32),
        "bn_beta": 0.1 * jax.random.normal(k_be, (outplanes,), jnp.float32),
        "bn_mean": 0.1 * jax.random.normal(k_m, (outplanes,), jnp.float32),
        "bn_var": jnp.abs(1.0 + 0.1 * jax.random.normal(k_v, (outplanes,), jnp.float32)),
    }


if __name__ == "__main__":
    key = jax.random.PRNGKey(0)
    B, Cp, Ci, N = 2, 4, 4, 16
    inplanes = Cp + Ci
    outplanes = 16

    k_p, k_i, k_param = jax.random.split(key, 3)
    point_features = jax.random.normal(k_p, (B, Cp, N), jnp.float32)
    img_features = jax.random.normal(k_i, (B, Ci, N), jnp.float32)
    params = init_params(k_param, inplanes, outplanes)

    out = fusion_conv_forward(point_features, img_features, params)
    out = jax.block_until_ready(out)

    # sanity check against plain-JAX f32 reference
    # (kernel feeds the MXU with bf16 activations/weights -> loosened tolerance)
    x = jnp.concatenate([point_features, img_features], axis=1)
    scale = params["bn_gamma"] / jnp.sqrt(params["bn_var"] + 1e-5)
    conv = jnp.einsum("oc,bcn->bon", params["conv_w"], x) + params["conv_b"][None, :, None]
    ref = jnp.maximum(scale[None, :, None] * (conv - params["bn_mean"][None, :, None])
                      + params["bn_beta"][None, :, None], 0.0)
    assert out.shape == (B, outplanes, N)
    max_err = float(jnp.max(jnp.abs(out - ref)))
    assert jnp.allclose(out, ref, atol=2e-2, rtol=2e-2), max_err

    print("KERNEL_OK")
</pallas_src>

<mosaic_0001>
module attributes {stable_mosaic.version = 11 : i64} {
  func.func @_fusion_conv_kernel(%arg0: i32, %arg1: i32, %arg2: memref<1x4x16xbf16, #tpu.memory_space<vmem>>, %arg3: memref<1x4x16xbf16, #tpu.memory_space<vmem>>, %arg4: memref<16x4xbf16, #tpu.memory_space<vmem>>, %arg5: memref<16x4xbf16, #tpu.memory_space<vmem>>, %arg6: memref<16x1xf32, #tpu.memory_space<vmem>>, %arg7: memref<1x16x16xf32, #tpu.memory_space<vmem>>) attributes {dimension_semantics = [#tpu.dimension_semantics<parallel>, #tpu.dimension_semantics<parallel>], iteration_bounds = array<i64: 2, 1>, scalar_prefetch = 0 : i64, scratch_operands = 0 : i64, tpu.core_type = #tpu.core_type<tc>, window_params = [{transform_indices = @transform_0, window_bounds = array<i64: 1, 4, 16>}, {transform_indices = @transform_1, window_bounds = array<i64: 1, 4, 16>}, {pipeline_mode = #tpu.pipeline_mode<synchronous>, transform_indices = @transform_2, window_bounds = array<i64: 16, 4>}, {pipeline_mode = #tpu.pipeline_mode<synchronous>, transform_indices = @transform_3, window_bounds = array<i64: 16, 4>}, {pipeline_mode = #tpu.pipeline_mode<synchronous>, transform_indices = @transform_4, window_bounds = array<i64: 16, 1>}, {transform_indices = @transform_5, window_bounds = array<i64: 1, 16, 16>}]} {
    %c0 = arith.constant 0 : index
    %c0_0 = arith.constant 0 : index
    %0 = vector.load %arg4[%c0, %c0_0] : memref<16x4xbf16, #tpu.memory_space<vmem>>, vector<16x4xbf16>
    %c0_1 = arith.constant 0 : index
    %c0_2 = arith.constant 0 : index
    %c0_3 = arith.constant 0 : index
    %1 = vector.load %arg2[%c0_1, %c0_2, %c0_3] : memref<1x4x16xbf16, #tpu.memory_space<vmem>>, vector<1x4x16xbf16>
    %2 = vector.shape_cast %1 : vector<1x4x16xbf16> to vector<4x16xbf16>
    %cst = arith.constant dense<0.000000e+00> : vector<16x16xf32>
    %3 = tpu.matmul %0, %2, %cst {dimension_numbers = #tpu.dot_dimension_numbers<[1], [0], [0], [1], [0, 0, 1, 1], [], []>} : vector<16x4xbf16>, vector<4x16xbf16>, vector<16x16xf32> -> vector<16x16xf32>
    %c0_4 = arith.constant 0 : index
    %c0_5 = arith.constant 0 : index
    %4 = vector.load %arg5[%c0_4, %c0_5] : memref<16x4xbf16, #tpu.memory_space<vmem>>, vector<16x4xbf16>
    %c0_6 = arith.constant 0 : index
    %c0_7 = arith.constant 0 : index
    %c0_8 = arith.constant 0 : index
    %5 = vector.load %arg3[%c0_6, %c0_7, %c0_8] : memref<1x4x16xbf16, #tpu.memory_space<vmem>>, vector<1x4x16xbf16>
    %6 = vector.shape_cast %5 : vector<1x4x16xbf16> to vector<4x16xbf16>
    %cst_9 = arith.constant dense<0.000000e+00> : vector<16x16xf32>
    %7 = tpu.matmul %4, %6, %cst_9 {dimension_numbers = #tpu.dot_dimension_numbers<[1], [0], [0], [1], [0, 0, 1, 1], [], []>} : vector<16x4xbf16>, vector<4x16xbf16>, vector<16x16xf32> -> vector<16x16xf32>
    %8 = arith.addf %3, %7 : vector<16x16xf32>
    %c0_10 = arith.constant 0 : index
    %c0_11 = arith.constant 0 : index
    %9 = vector.load %arg6[%c0_10, %c0_11] : memref<16x1xf32, #tpu.memory_space<vmem>>, vector<16x1xf32>
    %10 = vector.broadcast %9 : vector<16x1xf32> to vector<16x16xf32>
    %11 = arith.addf %8, %10 : vector<16x16xf32>
    %cst_12 = arith.constant 0.000000e+00 : f32
    %12 = vector.broadcast %cst_12 : f32 to vector<16x16xf32>
    %13 = arith.maximumf %11, %12 : vector<16x16xf32>
    %c0_13 = arith.constant 0 : index
    %c0_14 = arith.constant 0 : index
    %c0_15 = arith.constant 0 : index
    %14 = vector.load %arg7[%c0_13, %c0_14, %c0_15] : memref<1x16x16xf32, #tpu.memory_space<vmem>>, vector<1x16x16xf32>
    %15 = vector.shape_cast %14 : vector<1x16x16xf32> to vector<16x16xf32>
    %16 = vector.shape_cast %13 : vector<16x16xf32> to vector<1x16x16xf32>
    tpu.vector_store %arg7[%c0_13, %c0_14, %c0_15], %16 {strides = array<i32>} : memref<1x16x16xf32, #tpu.memory_space<vmem>>, vector<1x16x16xf32>,
    return
  }
  func.func @transform_0(%arg0: i32, %arg1: i32) -> (i32, i32, i32) {
    %c0_i32 = arith.constant 0 : i32
    %c0_i32_0 = arith.constant 0 : i32
    return %arg0, %c0_i32, %arg1 : i32, i32, i32
  }
  func.func @transform_1(%arg0: i32, %arg1: i32) -> (i32, i32, i32) {
    %c0_i32 = arith.constant 0 : i32
    %c0_i32_0 = arith.constant 0 : i32
    return %arg0, %c0_i32, %arg1 : i32, i32, i32
  }
  func.func @transform_2(%arg0: i32, %arg1: i32) -> (i32, i32) {
    %c0_i32 = arith.constant 0 : i32
    %c0_i32_0 = arith.constant 0 : i32
    %c0_i32_1 = arith.constant 0 : i32
    return %c0_i32, %c0_i32_0 : i32, i32
  }
  func.func @transform_3(%arg0: i32, %arg1: i32) -> (i32, i32) {
    %c0_i32 = arith.constant 0 : i32
    %c0_i32_0 = arith.constant 0 : i32
    %c0_i32_1 = arith.constant 0 : i32
    return %c0_i32, %c0_i32_0 : i32, i32
  }
  func.func @transform_4(%arg0: i32, %arg1: i32) -> (i32, i32) {
    %c0_i32 = arith.constant 0 : i32
    %c0_i32_0 = arith.constant 0 : i32
    %c0_i32_1 = arith.constant 0 : i32
    return %c0_i32, %c0_i32_0 : i32, i32
  }
  func.func @transform_5(%arg0: i32, %arg1: i32) -> (i32, i32, i32) {
    %c0_i32 = arith.constant 0 : i32
    %c0_i32_0 = arith.constant 0 : i32
    return %arg0, %c0_i32, %arg1 : i32, i32, i32
  }
}

</mosaic_0001>

<bundles_post_ra>
// kernel: tpu_custom_call.1
= control target key start
LH: loop header
LB: loop body
LE: loop exit
PB: predicated region body
PF: predicated region fallthrough
CT: control target
= control target key end

     0   :  { %10 = vsyncpa [#allocation3], 0  ;;  %s852_s0 = inlined_call_operand.vmem [shape: bf16[2,4,16], index: 0, kind: input, shape index: {}]   ;;  %s853_s1 = inlined_call_operand.vmem [shape: bf16[2,4,16], index: 1, kind: input, shape index: {}]   ;;  %s854_s2 = inlined_call_operand.vmem [shape: bf16[16,4], index: 2, kind: input, shape index: {}]   ;;  %s855_s3 = inlined_call_operand.vmem [shape: bf16[16,4], index: 3, kind: input, shape index: {}]   ;;  %s856_s4 = inlined_call_operand.vmem [shape: f32[16,1], index: 4, kind: input, shape index: {}]   ;;  %s857_s5 = inlined_call_operand.hbm [shape: f32[2,16,16], index: 5, kind: output, shape index: {}]  }
   0x1   :  { %12 = vsyncpa [#allocation3 + $0x1], 0  ;;  %s721_s18 = smov 0   ;;  %s723_s19 = smov 0  }
   0x2   :  { %s725_s20 = smov 0   ;;  %s727_s21 = smov 0  }
   0x3   :  { %s729_s22 = smov 0   ;;  %s731_s23 = smov 0  }
   0x4 LB: > { %s510_s24 = sadd.s32 4294967295, %s683_s23   ;;  %s511_s25 = sadd.s32 4294967294, %s683_s23   ;;  %s683_s23 = sphi %s731_s23, %s18_s23   ;;  %s679_s22 = sphi %s729_s22, %s864_s22   ;;  %s675_s21 = sphi %s727_s21, %s863_s21   ;;  %s671_s20 = sphi %s725_s20, %s862_s20   ;;  %s667_s19 = sphi %s723_s19, %s861_s19   ;;  %s663_s18 = sphi %s721_s18, %s860_s18  }
   0x5   : > { %s30_s26 = sadd.s32 1, %s679_s22  ;;  %s158_s27 = sadd.s32 1, %s671_s20 }
   0x6   : > { %p32_p0 = scmp.ge.s32.totalorder %s30_s26, 2  ;;  %p168_p1 = scmp.ne.s32.totalorder %s671_s20, %s667_s19 }
   0x7   : > { %p169_p2 = scmp.eq.s32.totalorder %s510_s24, 1  ;;  %p174_p3 = scmp.ne.s32.totalorder %s667_s19, %s663_s18 }
   0x8   : > { %s866_s26 = smov (%p32_p0, %s30_s26), 0  ;;  %p175_p5 = scmp.eq.s32.totalorder %s511_s25, 1 }
   0x9   : > { %p761_p4 = por %p169_p2, %p168_p1  ;;  %s153_s29 = ssub.s32 %s679_s22, %s866_s26 }
   0xa   : > { %p514_p6 = scmp.ge.s32.totalorder %s683_s23, 1  ;;  %p156_p7 = scmp.eq.s32.totalorder %s153_s29, 0 }
   0xb   : > { %p768_p8 = por %p175_p5, %p174_p3  ;;  %p222_p9 = scmp.lt.s32.totalorder %s683_s23, 3 }
   0xc   : > { %s774_s6 = scalar_select %p156_p7, %s671_s20, %s158_s27  }
   0xd   : > { %p223_p10 = pnand %p514_p6, %p222_p9 }
   0xe   : > { %p259_p11 = scmp.lt.s32.totalorder (!%p223_p10), %s675_s21, 1  ;;  %s256_s8 = sand.u32 (!%p223_p10), 1, %s667_s19  }
   0xf   : > { %226 = sbr.rel (%p223_p10) target bundleno = 247 (0xf7), region = 40  ;;  %s515_s9 = sshll.u32 (!%p223_p10), %s256_s8, 4 }
  0x10   : > { %s258_s11 = scalar_lea.vmem (!%p223_p10), [#allocation2], %s515_s9  ;;  %s688_s17 = smov (!%p223_p10), [#allocation2]  }
  0x11   : > { %s420_s12 = sshll.u32 (!%p223_p10), %s258_s11, 4  ;;  %s611_s24 = sshll.u32 (!%p223_p10), %s688_s17, 4  ;;  %s804_s12 = int_to_ptr.vmem [resolvable:$true] %s420_s12  ;;  %s612_s24 = int_to_ptr.vmem [resolvable:$false] %s611_s24 }
  0x12   : > { %s613_s25 = scalar_lea.vmem (!%p223_p10), %s612_s24, 512  ;;  %p614_p1 = scmp.lt.s32.totalorder (!%p223_p10), %s804_s12, %s612_s24 }
  0x14   : > { %v685_v0 = vmov 0.0   ;;  %s260_s7 = scalar_select %p259_p11, %s675_s21, 1  ;;  %vm686_vm0 = vmmov 0   ;;  %v386_v1 = vld [vmem:[%s856_s4] sm:$0xff]  ;;  %v687_v2 = vmov 0   ;;  %vm289_vm1 = vcmask 1041408  }
  0x15   : > { %532 = vmatprep.subr.bf16.mxu0 %v685_v0  ;;  %538 = vmatprep.subr.bf16.mxu1 %v685_v0  ;;  %v387_v5 = vld [vmem:[%s856_s4 + $0x8] sm:$0xff]  ;;  %v605_v8 = vld [vmem:[%s855_s3] sm:$0xff]   ;;  %vm285_vm2 = vcmask 31744   ;;  %vm402_vm3 = vcmask 130048  }
  0x16   : > { %534 = vmatprep.mubr.msk.bf16.mxu0 %vm686_vm0, %v685_v0  ;;  %540 = vmatprep.mubr.msk.bf16.mxu1 %vm686_vm0, %v685_v0  ;;  %s516_s10 = sshll.u32 %s260_s7, 1  ;;  %v606_v9 = vld [vmem:[%s854_s2] sm:$0xff]  }
  0x17   : > { %604 = vset.pattern.permute.xlu0 %v687_v2  ;;  %s272_s13 = scalar_lea.vmem %s853_s1, %s516_s10  ;;  %s265_s16 = scalar_lea.vmem %s852_s0, %s516_s10 }
  0x18   : > { %390 = vperm.xlu0 %604, %v386_v1   ;;  %v279_v3 = vld [vmem:[%s272_s13] sm:$0x3]  ;;  %s527_s10 = sshll.u32 %s675_s21, 8  ;;  %s807_s21 = scalar_lea.sflag [#allocation3], %s256_s8 }
  0x19   : > { %v276_v4 = vld [vmem:[%s265_s16] sm:$0x3]  ;;  %v291_v6 = vsel %vm289_vm1, %v279_v3, 0  ;;  %s802_s15 = scalar_lea.hbm %s857_s5, %s527_s10  ;;  %s607_s16 = scalar_lea.vmem %s804_s12, 256 }
  0x1a   : > { %v343_v7 = vsel %vm289_vm1, %v276_v4, 0  ;;  %533 = vmatpush3.bf16.msra.mxu0 %v291_v6  ;;  %p608_p12 = scmp.ne.s32.totalorder %s804_s12, %s607_s16  ;;  %p615_p2 = scmp.lt.s32.totalorder %s613_s25, %s607_s16 }
  0x1b   : > { %539 = vmatpush3.bf16.msra.mxu1 %v343_v7 }
  0x1c   : > { %395 = vperm.xlu0 %604, %v387_v5   ;;  %p609_p13 = pnand %p608_p12, %p761_p4  ;;  %p616_p3 = por %p615_p2, %p614_p1 }
  0x1d   : > { %535 = vmatmul.mubr.msk.bf16.vlgmr.msra.gmra.mxu0 %vm285_vm2, %v605_v8 }
  0x1e   : > { %541 = vmatmul.mubr.msk.bf16.vlgmr.msra.gmra.mxu1 %vm285_vm2, %v606_v9  ;;  %p610_p0 = pneg %p609_p13 }
  0x20   : > { %p617_p5 = pnand %p616_p3, %p610_p0 }
  0x93   : > { %v391_v10 = vpop.permute.xlu0 %390 }
  0x97   : > { %v396_v20 = vpop.permute.xlu0 %395 }
  0xdd   : > { %v327_v11 = vpop.f32.mrf.mxu0 }
  0xde   : > { %v379_v12 = vpop.f32.mrf.mxu1 }
  0xdf   : > { %v380_v13 = vadd.f32 %v379_v12, %v327_v11  ;;  %v536_v14 = vpop.f32.mrf.mxu0 }
  0xe0   : > { %v542_v15 = vpop.f32.mrf.mxu1 }
  0xe1   : > { %v398_v16 = vadd.f32 %v391_v10, %v380_v13  ;;  %v330_v17 = vpop.f32.mrf.mxu0 }
  0xe2   : > { %v382_v18 = vpop.f32.mrf.mxu1 }
  0xe3   : > { %v400_v19 = vmax.f32 %v398_v16, 0.0  ;;  %v383_v21 = vadd.f32 %v382_v18, %v330_v17  ;;  %v537_v22 = vpop.f32.mrf.mxu0 }
  0xe4   : > { %v543_v23 = vpop.f32.mrf.mxu1 }
  0xe5   : > { %403 = vst.msk [vmem:[%s258_s11] sm:$0xff] %vm402_vm3, %v400_v19  ;;  %v399_v24 = vadd.f32 %v396_v20, %v383_v21 }
  0xe7   : > { %v401_v25 = vmax.f32 %v399_v24, 0.0 }
  0xe9   : > { %404 = vst.msk [vmem:[%s258_s11 + $0x8] sm:$0xff] %vm402_vm3, %v401_v25 }
  0xea   : > { %620 = shalt.err (!%p617_p5)
}
  0xeb   : > { %s621_s27 = scalar_lea.hbm %s802_s15, 256  ;;  %s625_s8 = scalar_lea.hbm %s857_s5, 512 }
  0xec   : > { %p622_p6 = scmp.ne.s32.totalorder %s802_s15, %s621_s27  ;;  %p626_p10 = scmp.lt.s32.totalorder %s802_s15, %s857_s5 }
  0xed   : > { %p627_p11 = scmp.lt.s32.totalorder %s625_s8, %s621_s27 }
  0xee   : > { %p623_p7 = pnand %p622_p6, %p761_p4 }
  0xef   : > { %p628_p12 = por %p627_p11, %p626_p10 }
  0xf0   : > { %p624_p9 = pneg %p623_p7 }
  0xf2   : > { %p629_p13 = pnand %p628_p12, %p624_p9 }
  0xf4   : > { %632 = shalt.err (!%p629_p13)
}
  0xf5   : > { %s689_s11 = smov 128   ;;  %s690_s13 = smov 8  }
  0xf6   : > { %544 = dma.vmem_to_hbm [thread:$0]  (%p761_p4), %s804_s12, 256, %s802_s15, %s807_s21, %s689_s11, %s689_s11, %s690_s13  }
  0xf7 PF: > { %p550_p0 = scmp.ge.s32.totalorder %s683_s23, 2  ;;  %s435_s14 = sand.u32 1, %s663_s18  }
  0xf8   : > { %s436_s16 = scalar_lea.sflag [#allocation3], %s435_s14 }
  0xf9   : > { %p547_p1 = pnand %p550_p0, %p768_p8 }
  0xfb   : > { %p548_p2 = pneg %p547_p1 }
  0xfd   : > { %658 = dma.done.wait (%p548_p2), %s436_s16, 256  }
  0xfe   : > { %660 = vsyncadd (%p548_p2), %s436_s16, 4294967040  ;;  %s18_s23 = sadd.s32 1, %s683_s23   ;;  %s860_s18 = smov %s667_s19 }
  0xff   : > { %p15_p3 = scmp.ge.s32.totalorder %s18_s23, 4   ;;  %s861_s19 = smov %s671_s20 }
 0x100   : > { %s862_s20 = smov %s774_s6  ;;  %s863_s21 = smov %s679_s22 }
 0x101   : > { %s864_s22 = smov %s866_s26  ;;  %17 = sbr.rel (!%p15_p3) target bundleno = 4 (0x4), region = 78 }
 0x106   :  { %441 = vsyncpa [#allocation3], 1 }
 0x107   :  { %443 = vsyncpa [#allocation3 + $0x1], 1 }

</bundles_post_ra>
